<compile_context>
chip_gen: v6e
topology: v6e:2x2x1
jax: 0.10.0
libtpu: 0.0.40
codegen_flags: <defaults>
</compile_context>

<pallas_src>
import jax
import jax.numpy as jnp
from jax.experimental import pallas as pl
from jax.experimental.pallas import tpu as pltpu

HIDDEN = 256        # hidden width of the DQN MLP
MAX_TILE_B = 2048   # per-step footprint stays well under every chip's VMEM


def dqn_kernel(x_ref, w1_ref, b1_ref, w2_ref, b2_ref, w3_ref, b3_ref, o_ref):
    # Layer 1: Linear + ReLU.  State arrives f32; cast to bf16 in VMEM so the
    # MXU runs bf16 operands with f32 accumulation (biases stay f32 on the VPU).
    x = x_ref[...].astype(jnp.bfloat16)
    h1 = jnp.dot(x, w1_ref[...], preferred_element_type=jnp.float32)
    h1 = jnp.maximum(h1 + b1_ref[...], 0.0).astype(jnp.bfloat16)
    # Layer 2: Linear + ReLU
    h2 = jnp.dot(h1, w2_ref[...], preferred_element_type=jnp.float32)
    h2 = jnp.maximum(h2 + b2_ref[...], 0.0).astype(jnp.bfloat16)
    # Layer 3: Linear (Q-values, no activation), stored at true action width.
    out = jnp.dot(h2, w3_ref[...], preferred_element_type=jnp.float32)
    o_ref[...] = (out + b3_ref[...]).astype(o_ref.dtype)


def _round_up(x, m):
    return ((x + m - 1) // m) * m


def _is_v7x():
    try:
        kind = jax.devices()[0].device_kind.lower()
        return ("v7" in kind) or ("7x" in kind)
    except Exception:
        return False


def _choose_tiling(B, force_two_steps):
    """Returns (tile_b, padded_batch, n_grid_steps)."""
    # Whole batch in one tile whenever it fits: no grid-step overhead and no
    # host-side batch padding at all (block shape == full array dims is legal).
    if B <= MAX_TILE_B and not (force_two_steps and B >= 512):
        return B, B, 1
    # v7x: guarantee >= 2 grid steps so ("parallel",) shards across both TCs.
    if force_two_steps and B <= 2 * MAX_TILE_B:
        tile_b = _round_up(pl.cdiv(B, 2), 8)
        return tile_b, 2 * tile_b, 2
    tile_b = MAX_TILE_B
    bp = _round_up(B, tile_b)
    return tile_b, bp, bp // tile_b


def _resident_spec(shape):
    """Weights/biases: same block every grid step (VMEM-resident).

    Constant index_map means the block is fetched once; request a single
    buffer (no pointless double-buffering) when the API supports it.
    """
    idx = lambda i: (0, 0)
    if hasattr(pl, "Buffered"):
        try:
            return pl.BlockSpec(shape, idx, pipeline_mode=pl.Buffered(1))
        except (TypeError, ValueError):
            pass
    return pl.BlockSpec(shape, idx)


def prepare_params(params):
    """One-time host-side prep: (in, out) layout, bf16 weights, f32 biases."""
    return {
        "w1": params["w1"].astype(jnp.bfloat16),   # (state_n, 256)
        "b1": params["b1"].astype(jnp.float32),    # (1, 256)
        "w2": params["w2"].astype(jnp.bfloat16),   # (256, 256)
        "b2": params["b2"].astype(jnp.float32),    # (1, 256)
        "w3": params["w3"].astype(jnp.bfloat16),   # (256, action_n)
        "b3": params["b3"].astype(jnp.float32),    # (1, action_n)
    }


def dqn_forward(state, prepped, action_n):
    """state: [B, state_n] float32 -> Q-values [B, action_n] float32."""
    B, state_n = state.shape
    hidden = prepped["w1"].shape[1]
    assert prepped["w1"].shape[0] == state_n, "state_n mismatch with w1"
    assert prepped["w3"].shape[1] == action_n, "action_n mismatch with w3"

    tile_b, bp, n_steps = _choose_tiling(B, _is_v7x())

    x = state
    if bp > B:
        # Only a small f32 row-pad up to the tile multiple (zeros -> padded
        # output rows are bias-propagated junk, sliced off below).
        x = jnp.pad(state, ((0, bp - B), (0, 0)))

    flops = 2 * bp * (state_n * hidden + hidden * hidden + hidden * action_n)
    bytes_accessed = (
        bp * state_n * 4                                                  # state (f32)
        + (state_n * hidden + hidden * hidden + hidden * action_n) * 2   # weights (bf16)
        + (2 * hidden + action_n) * 4                                     # biases (f32)
        + bp * action_n * 4)                                              # output (f32)

    out = pl.pallas_call(
        dqn_kernel,
        out_shape=jax.ShapeDtypeStruct((bp, action_n), jnp.float32),
        grid=(n_steps,),
        in_specs=[
            pl.BlockSpec((tile_b, state_n), lambda i: (i, 0)),  # state tile (f32)
            _resident_spec((state_n, hidden)),                  # w1
            _resident_spec((1, hidden)),                        # b1
            _resident_spec((hidden, hidden)),                   # w2
            _resident_spec((1, hidden)),                        # b2
            _resident_spec((hidden, action_n)),                 # w3
            _resident_spec((1, action_n)),                      # b3
        ],
        out_specs=pl.BlockSpec((tile_b, action_n), lambda i: (i, 0)),
        compiler_params=pltpu.CompilerParams(
            dimension_semantics=("parallel",),
            vmem_limit_bytes=32 * 1024 * 1024),
        cost_estimate=pl.CostEstimate(
            flops=flops, transcendentals=0, bytes_accessed=bytes_accessed),
    )(x, prepped["w1"], prepped["b1"], prepped["w2"], prepped["b2"],
      prepped["w3"], prepped["b3"])

    return out if bp == B else out[:B]


def dqn_reference(state, prepped, action_n):
    """Pure-JAX reference mirroring the kernel's bf16/f32 numerics.

    NOTE: this validates the kernel against its own bf16 quantization, not
    against a pure-f32 PyTorch DQN (difference is bf16 rounding only).
    """
    x = state.astype(jnp.bfloat16)
    h1 = jnp.maximum(
        jnp.dot(x, prepped["w1"], preferred_element_type=jnp.float32)
        + prepped["b1"], 0.0).astype(jnp.bfloat16)
    h2 = jnp.maximum(
        jnp.dot(h1, prepped["w2"], preferred_element_type=jnp.float32)
        + prepped["b2"], 0.0).astype(jnp.bfloat16)
    out = (jnp.dot(h2, prepped["w3"], preferred_element_type=jnp.float32)
           + prepped["b3"])
    return out[:, :action_n]


def init_params(key, state_n, action_n, hidden=HIDDEN):
    """Deterministic synthetic init (nn.Linear-like, stored (in, out), f32)."""
    ks = jax.random.split(key, 6)

    def uniform(k, shape, fan_in):
        bound = 1.0 / jnp.sqrt(fan_in)
        return jax.random.uniform(k, shape, jnp.float32, -bound, bound)

    # PyTorch nn.Linear weight is (out, in); we store (in, out) for x @ W.
    return {
        "w1": uniform(ks[0], (state_n, hidden), state_n),
        "b1": uniform(ks[1], (1, hidden), state_n),
        "w2": uniform(ks[2], (hidden, hidden), hidden),
        "b2": uniform(ks[3], (1, hidden), hidden),
        "w3": uniform(ks[4], (hidden, action_n), hidden),
        "b3": uniform(ks[5], (1, action_n), hidden),
    }


if __name__ == "__main__":
    key = jax.random.PRNGKey(0)
    k_param, k_state, k_big = jax.random.split(key, 3)

    batch, state_n, action_n = 8, 32, 8
    params = init_params(k_param, state_n, action_n)
    prepped = prepare_params(params)

    # Small-batch path: single tile, no padding, no wrapper pad/slice ops.
    state = jax.random.normal(k_state, (batch, state_n), jnp.float32)
    q = jax.block_until_ready(dqn_forward(state, prepped, action_n))
    ref = dqn_reference(state, prepped, action_n)
    assert q.shape == (batch, action_n)
    assert jnp.allclose(q, ref, atol=1e-2, rtol=1e-2)

    # Large-batch path: multi-step grid (weights resident) + ragged batch pad.
    big_state = jax.random.normal(k_big, (4100, state_n), jnp.float32)
    q_big = jax.block_until_ready(dqn_forward(big_state, prepped, action_n))
    ref_big = dqn_reference(big_state, prepped, action_n)
    assert q_big.shape == (4100, action_n)
    assert jnp.allclose(q_big, ref_big, atol=1e-2, rtol=1e-2)

    print("KERNEL_OK")
</pallas_src>

<mosaic_0001>
module attributes {stable_mosaic.version = 11 : i64} {
  func.func @dqn_kernel(%arg0: i32, %arg1: memref<8x32xf32, #tpu.memory_space<vmem>>, %arg2: memref<32x256xbf16, #tpu.memory_space<vmem>>, %arg3: memref<1x256xf32, #tpu.memory_space<vmem>>, %arg4: memref<256x256xbf16, #tpu.memory_space<vmem>>, %arg5: memref<1x256xf32, #tpu.memory_space<vmem>>, %arg6: memref<256x8xbf16, #tpu.memory_space<vmem>>, %arg7: memref<1x8xf32, #tpu.memory_space<vmem>>, %arg8: memref<8x8xf32, #tpu.memory_space<vmem>>) attributes {dimension_semantics = [#tpu.dimension_semantics<parallel>], iteration_bounds = array<i64: 1>, scalar_prefetch = 0 : i64, scratch_operands = 0 : i64, tpu.core_type = #tpu.core_type<tc>, window_params = [{transform_indices = @transform_0, window_bounds = array<i64: 8, 32>}, {pipeline_mode = #tpu.pipeline_mode<synchronous>, transform_indices = @transform_1, window_bounds = array<i64: 32, 256>}, {pipeline_mode = #tpu.pipeline_mode<synchronous>, transform_indices = @transform_2, window_bounds = array<i64: 1, 256>}, {pipeline_mode = #tpu.pipeline_mode<synchronous>, transform_indices = @transform_3, window_bounds = array<i64: 256, 256>}, {pipeline_mode = #tpu.pipeline_mode<synchronous>, transform_indices = @transform_4, window_bounds = array<i64: 1, 256>}, {pipeline_mode = #tpu.pipeline_mode<synchronous>, transform_indices = @transform_5, window_bounds = array<i64: 256, 8>}, {pipeline_mode = #tpu.pipeline_mode<synchronous>, transform_indices = @transform_6, window_bounds = array<i64: 1, 8>}, {transform_indices = @transform_7, window_bounds = array<i64: 8, 8>}]} {
    %c0 = arith.constant 0 : index
    %c0_0 = arith.constant 0 : index
    %0 = vector.load %arg1[%c0, %c0_0] : memref<8x32xf32, #tpu.memory_space<vmem>>, vector<8x32xf32>
    %1 = arith.truncf %0 : vector<8x32xf32> to vector<8x32xbf16>
    %c0_1 = arith.constant 0 : index
    %c0_2 = arith.constant 0 : index
    %2 = vector.load %arg2[%c0_1, %c0_2] : memref<32x256xbf16, #tpu.memory_space<vmem>>, vector<32x256xbf16>
    %cst = arith.constant dense<0.000000e+00> : vector<8x256xf32>
    %3 = tpu.matmul %1, %2, %cst {dimension_numbers = #tpu.dot_dimension_numbers<[1], [0], [0], [1], [0, 0, 1, 1], [], []>} : vector<8x32xbf16>, vector<32x256xbf16>, vector<8x256xf32> -> vector<8x256xf32>
    %c0_3 = arith.constant 0 : index
    %c0_4 = arith.constant 0 : index
    %4 = vector.load %arg3[%c0_3, %c0_4] : memref<1x256xf32, #tpu.memory_space<vmem>>, vector<1x256xf32>
    %5 = vector.broadcast %4 : vector<1x256xf32> to vector<8x256xf32>
    %6 = arith.addf %3, %5 : vector<8x256xf32>
    %cst_5 = arith.constant 0.000000e+00 : f32
    %7 = vector.broadcast %cst_5 : f32 to vector<8x256xf32>
    %8 = arith.maximumf %6, %7 : vector<8x256xf32>
    %9 = arith.truncf %8 : vector<8x256xf32> to vector<8x256xbf16>
    %c0_6 = arith.constant 0 : index
    %c0_7 = arith.constant 0 : index
    %10 = vector.load %arg4[%c0_6, %c0_7] : memref<256x256xbf16, #tpu.memory_space<vmem>>, vector<256x256xbf16>
    %cst_8 = arith.constant dense<0.000000e+00> : vector<8x256xf32>
    %11 = tpu.matmul %9, %10, %cst_8 {dimension_numbers = #tpu.dot_dimension_numbers<[1], [0], [0], [1], [0, 0, 1, 1], [], []>} : vector<8x256xbf16>, vector<256x256xbf16>, vector<8x256xf32> -> vector<8x256xf32>
    %c0_9 = arith.constant 0 : index
    %c0_10 = arith.constant 0 : index
    %12 = vector.load %arg5[%c0_9, %c0_10] : memref<1x256xf32, #tpu.memory_space<vmem>>, vector<1x256xf32>
    %13 = vector.broadcast %12 : vector<1x256xf32> to vector<8x256xf32>
    %14 = arith.addf %11, %13 : vector<8x256xf32>
    %cst_11 = arith.constant 0.000000e+00 : f32
    %15 = vector.broadcast %cst_11 : f32 to vector<8x256xf32>
    %16 = arith.maximumf %14, %15 : vector<8x256xf32>
    %17 = arith.truncf %16 : vector<8x256xf32> to vector<8x256xbf16>
    %c0_12 = arith.constant 0 : index
    %c0_13 = arith.constant 0 : index
    %18 = vector.load %arg6[%c0_12, %c0_13] : memref<256x8xbf16, #tpu.memory_space<vmem>>, vector<256x8xbf16>
    %cst_14 = arith.constant dense<0.000000e+00> : vector<8x8xf32>
    %19 = tpu.matmul %17, %18, %cst_14 {dimension_numbers = #tpu.dot_dimension_numbers<[1], [0], [0], [1], [0, 0, 1, 1], [], []>} : vector<8x256xbf16>, vector<256x8xbf16>, vector<8x8xf32> -> vector<8x8xf32>
    %c0_15 = arith.constant 0 : index
    %c0_16 = arith.constant 0 : index
    %20 = vector.load %arg7[%c0_15, %c0_16] : memref<1x8xf32, #tpu.memory_space<vmem>>, vector<1x8xf32>
    %21 = vector.broadcast %20 : vector<1x8xf32> to vector<8x8xf32>
    %22 = arith.addf %19, %21 : vector<8x8xf32>
    %c0_17 = arith.constant 0 : index
    %c0_18 = arith.constant 0 : index
    %23 = vector.load %arg8[%c0_17, %c0_18] : memref<8x8xf32, #tpu.memory_space<vmem>>, vector<8x8xf32>
    tpu.vector_store %arg8[%c0_17, %c0_18], %22 {strides = array<i32>} : memref<8x8xf32, #tpu.memory_space<vmem>>, vector<8x8xf32>,
    return
  }
  func.func @transform_0(%arg0: i32) -> (i32, i32) {
    %c0_i32 = arith.constant 0 : i32
    %c0_i32_0 = arith.constant 0 : i32
    return %arg0, %c0_i32 : i32, i32
  }
  func.func @transform_1(%arg0: i32) -> (i32, i32) {
    %c0_i32 = arith.constant 0 : i32
    %c0_i32_0 = arith.constant 0 : i32
    %c0_i32_1 = arith.constant 0 : i32
    return %c0_i32, %c0_i32_0 : i32, i32
  }
  func.func @transform_2(%arg0: i32) -> (i32, i32) {
    %c0_i32 = arith.constant 0 : i32
    %c0_i32_0 = arith.constant 0 : i32
    %c0_i32_1 = arith.constant 0 : i32
    return %c0_i32, %c0_i32_0 : i32, i32
  }
  func.func @transform_3(%arg0: i32) -> (i32, i32) {
    %c0_i32 = arith.constant 0 : i32
    %c0_i32_0 = arith.constant 0 : i32
    %c0_i32_1 = arith.constant 0 : i32
    return %c0_i32, %c0_i32_0 : i32, i32
  }
  func.func @transform_4(%arg0: i32) -> (i32, i32) {
    %c0_i32 = arith.constant 0 : i32
    %c0_i32_0 = arith.constant 0 : i32
    %c0_i32_1 = arith.constant 0 : i32
    return %c0_i32, %c0_i32_0 : i32, i32
  }
  func.func @transform_5(%arg0: i32) -> (i32, i32) {
    %c0_i32 = arith.constant 0 : i32
    %c0_i32_0 = arith.constant 0 : i32
    %c0_i32_1 = arith.constant 0 : i32
    return %c0_i32, %c0_i32_0 : i32, i32
  }
  func.func @transform_6(%arg0: i32) -> (i32, i32) {
    %c0_i32 = arith.constant 0 : i32
    %c0_i32_0 = arith.constant 0 : i32
    %c0_i32_1 = arith.constant 0 : i32
    return %c0_i32, %c0_i32_0 : i32, i32
  }
  func.func @transform_7(%arg0: i32) -> (i32, i32) {
    %c0_i32 = arith.constant 0 : i32
    %c0_i32_0 = arith.constant 0 : i32
    return %arg0, %c0_i32 : i32, i32
  }
}

</mosaic_0001>

<bundles_post_ra>
// kernel: tpu_custom_call.1
= control target key start
LH: loop header
LB: loop body
LE: loop exit
PB: predicated region body
PF: predicated region fallthrough
CT: control target
= control target key end

     0   :  { %12 = vsyncpa [#allocation3], 0  ;;  %s888_s0 = inlined_call_operand.vmem [shape: f32[8,32], index: 0, kind: input, shape index: {}]   ;;  %s889_s1 = inlined_call_operand.vmem [shape: bf16[32,256], index: 1, kind: input, shape index: {}]   ;;  %s890_s2 = inlined_call_operand.vmem [shape: f32[1,256], index: 2, kind: input, shape index: {}]   ;;  %s891_s3 = inlined_call_operand.hbm [shape: bf16[256,256], index: 3, kind: input, shape index: {}]   ;;  %s892_s4 = inlined_call_operand.vmem [shape: f32[1,256], index: 4, kind: input, shape index: {}]   ;;  %s893_s5 = inlined_call_operand.vmem [shape: bf16[256,8], index: 5, kind: input, shape index: {}]   ;;  %s894_s6 = inlined_call_operand.vmem [shape: f32[1,8], index: 6, kind: input, shape index: {}]   ;;  %s895_s7 = inlined_call_operand.hbm [shape: f32[8,8], index: 7, kind: output, shape index: {}]  }
   0x1   :  { %13 = vsyncpa [#allocation4], 0  ;;  %s765_s24 = smov [#allocation2]  }
   0x2   :  { %s25_s25 = sshll.u32 %s765_s24, 4  ;;  %s26_s25 = int_to_ptr.vmem [resolvable:$true] %s25_s25 }
   0x3   :  { %s729_s26 = scalar_lea.vmem %s26_s25, 4096  ;;  %p734_p1 = scmp.lt.s32.totalorder %s26_s25, %s26_s25 }
   0x4   :  { %p730_p0 = scmp.ne.s32.totalorder %s26_s25, %s729_s26  ;;  %p735_p2 = scmp.lt.s32.totalorder %s729_s26, %s729_s26 }
   0x6   :  { %p736_p3 = por %p735_p2, %p734_p1 }
   0x8   :  { %p737_p4 = pnand %p736_p3, %p730_p0 }
   0xa   :  { %740 = shalt.err (!%p737_p4)
}
   0xb   :  { %s766_s27 = smov 128   ;;  %s767_s28 = smov 8  }
   0xc   :  { %31 = dma.hbm_to_vmem [thread:$0]  %s891_s3, 4096, %s26_s25, [#allocation3], %s766_s27, %s766_s27, %s767_s28  }
   0xd   :  { %761 = dma.done.wait [#allocation3], 4096  }
   0xe   :  { %762 = vsyncadd [#allocation3], 4294963200  ;;  %v768_v0 = vmov 0   ;;  %v651_v1 = vld [vmem:[%s889_s1 + $0x14] ss:$8 sps:$4 sm:$0xff]   ;;  %v42_v5 = vld [vmem:[%s888_s0] sm:$0xff]  ;;  %v50_v51 = vlaneseq }
   0xf   :  { %116 = vmatprep.mubr.bf16.mxu0 %v768_v0  ;;  %v653_v2 = vld [vmem:[%s889_s1 + $0x10] ss:$8 sps:$4 sm:$0xff]   ;;  %96 = vmatprep.subr.bf16.mxu0 %v651_v1  ;;  %v654_v3 = vld [vmem:[%s889_s1 + $0x4] ss:$8 sps:$4 sm:$0xff]   ;;  %v656_v4 = vld [vmem:[%s889_s1] ss:$8 sps:$4 sm:$0xff]   ;;  %v43_v9 = vpack.c.bf16 %v42_v5, %v42_v5 }
  0x10   :  { %97 = vmatpush1.bf16.msra.mxu0 %v653_v2  ;;  %v657_v6 = vld [vmem:[#allocation2 + $0x74] ss:$8 sps:$4 sm:$0xff]   ;;  %v659_v7 = vld [vmem:[#allocation2 + $0x70] ss:$8 sps:$4 sm:$0xff]   ;;  %v660_v8 = vld [vmem:[#allocation2 + $0x64] ss:$8 sps:$4 sm:$0xff]  }
  0x11   :  { %98 = vmatprep.subr.bf16.mxu0 %v654_v3  ;;  %333 = vmatprep.subr.bf16.mxu1 %v657_v6  ;;  %v662_v10 = vld [vmem:[#allocation2 + $0x60] ss:$8 sps:$4 sm:$0xff]   ;;  %vm80_vm0 = vcmask 261120   ;;  %v663_v11 = vld [vmem:[#allocation2 + $0x54] ss:$8 sps:$4 sm:$0xff]   ;;  %v51_v52 = vshrl.u32 %v50_v51, 7 }
  0x12   :  { %334 = vmatpush1.bf16.msra.mxu1 %v659_v7  ;;  %v665_v12 = vld [vmem:[#allocation2 + $0x50] ss:$8 sps:$4 sm:$0xff]   ;;  %v666_v13 = vld [vmem:[#allocation2 + $0x44] ss:$8 sps:$4 sm:$0xff]   ;;  %v668_v14 = vld [vmem:[#allocation2 + $0x40] ss:$8 sps:$4 sm:$0xff]  }
  0x13   :  { %335 = vmatprep.subr.bf16.mxu1 %v660_v8  ;;  %v669_v15 = vld [vmem:[#allocation2 + $0x34] ss:$8 sps:$4 sm:$0xff]   ;;  %v671_v16 = vld [vmem:[#allocation2 + $0x30] ss:$8 sps:$4 sm:$0xff]   ;;  %v672_v17 = vld [vmem:[#allocation2 + $0x24] ss:$8 sps:$4 sm:$0xff]  }
  0x14   :  { %99 = vmatpush1.bf16.msra.mxu0 %v656_v4  ;;  %v674_v18 = vld [vmem:[#allocation2 + $0x20] ss:$8 sps:$4 sm:$0xff]   ;;  %v675_v19 = vld [vmem:[#allocation2 + $0x14] ss:$8 sps:$4 sm:$0xff]   ;;  %v677_v20 = vld [vmem:[#allocation2 + $0x10] ss:$8 sps:$4 sm:$0xff]  }
  0x15   :  { %v678_v21 = vld [vmem:[#allocation2 + $0x4] ss:$8 sps:$4 sm:$0xff]   ;;  %v680_v22 = vld [vmem:[#allocation2] ss:$8 sps:$4 sm:$0xff]   ;;  %v681_v23 = vld [vmem:[#allocation2 + $0xf4] ss:$8 sps:$4 sm:$0xff]  }
  0x16   :  { %336 = vmatpush1.bf16.msra.mxu1 %v662_v10  ;;  %v683_v24 = vld [vmem:[#allocation2 + $0xf0] ss:$8 sps:$4 sm:$0xff]   ;;  %v684_v25 = vld [vmem:[#allocation2 + $0xe4] ss:$8 sps:$4 sm:$0xff]   ;;  %v686_v26 = vld [vmem:[#allocation2 + $0xe0] ss:$8 sps:$4 sm:$0xff]  }
  0x17   :  { %574 = vmatmul.mubr.msk.bf16.vlgmr.msra.gmra.mxu0 %vm80_vm0, %v43_v9  ;;  %337 = vmatprep.subr.bf16.mxu1 %v663_v11  ;;  %v687_v27 = vld [vmem:[#allocation2 + $0xd4] ss:$8 sps:$4 sm:$0xff]   ;;  %v689_v28 = vld [vmem:[#allocation2 + $0xd0] ss:$8 sps:$4 sm:$0xff]   ;;  %v690_v29 = vld [vmem:[#allocation2 + $0xc4] ss:$8 sps:$4 sm:$0xff]  }
  0x18   :  { %v692_v30 = vld [vmem:[#allocation2 + $0xc0] ss:$8 sps:$4 sm:$0xff]   ;;  %v693_v31 = vld [vmem:[#allocation2 + $0xb4] ss:$8 sps:$4 sm:$0xff]   ;;  %v695_v32 = vld [vmem:[#allocation2 + $0xb0] ss:$8 sps:$4 sm:$0xff]  }
  0x19   :  { %v696_v33 = vld [vmem:[#allocation2 + $0xa4] ss:$8 sps:$4 sm:$0xff]   ;;  %v698_v34 = vld [vmem:[#allocation2 + $0xa0] ss:$8 sps:$4 sm:$0xff]   ;;  %v699_v35 = vld [vmem:[#allocation2 + $0x94] ss:$8 sps:$4 sm:$0xff]  }
  0x1a   :  { %338 = vmatpush1.bf16.msra.mxu1 %v665_v12  ;;  %v701_v36 = vld [vmem:[#allocation2 + $0x90] ss:$8 sps:$4 sm:$0xff]   ;;  %v702_v37 = vld [vmem:[#allocation2 + $0x84] ss:$8 sps:$4 sm:$0xff]   ;;  %v704_v38 = vld [vmem:[#allocation2 + $0x80] ss:$8 sps:$4 sm:$0xff]  }
  0x1b   :  { %339 = vmatprep.subr.bf16.mxu1 %v666_v13  ;;  %v705_v39 = vld [vmem:[%s893_s5 + $0x78] sm:$0xff]   ;;  %v707_v41 = vld [vmem:[%s893_s5 + $0x70] sm:$0xff]   ;;  %v709_v43 = vld [vmem:[%s893_s5 + $0x68] sm:$0xff]   ;;  %v52_v53 = vsub.s32 0, %v51_v52  ;;  %v56_v55 = vsub.s32 1, %v51_v52  ;;  %vm553_vm1 = vcmask 64512  }
  0x1c   :  { %v706_v40 = vld [vmem:[%s893_s5 + $0x38] sm:$0xff]   ;;  %624 = vmatprep.subr.bf16.mxu0 %v705_v39  ;;  %v708_v42 = vld [vmem:[%s893_s5 + $0x30] sm:$0xff]   ;;  %v710_v44 = vld [vmem:[%s893_s5 + $0x28] sm:$0xff]  }
  0x1d   :  { %625 = vmatpush3.bf16.msra.mxu0 %v706_v40  ;;  %v711_v45 = vld [vmem:[%s893_s5 + $0x60] sm:$0xff]   ;;  %v713_v47 = vld [vmem:[%s893_s5 + $0x58] sm:$0xff]   ;;  %v715_v49 = vld [vmem:[%s893_s5 + $0x50] sm:$0xff]  }
  0x1e   :  { %340 = vmatpush1.bf16.msra.mxu1 %v668_v14  ;;  %626 = vmatprep.subr.bf16.mxu0 %v707_v41  ;;  %v712_v46 = vld [vmem:[%s893_s5 + $0x20] sm:$0xff]   ;;  %v714_v48 = vld [vmem:[%s893_s5 + $0x18] sm:$0xff]   ;;  %v716_v50 = vld [vmem:[%s893_s5 + $0x10] sm:$0xff]  }
  0x1f   :  { %341 = vmatprep.subr.bf16.mxu1 %v669_v15  ;;  %v48_v54 = vld [vmem:[%s890_s2] sm:$0x3]  ;;  %v717_v4 = vld [vmem:[%s893_s5 + $0x48] sm:$0xff]  }
  0x20   :  { %v53_v56 = vrot.slane %v48_v54, %v52_v53  ;;  %v57_v57 = vrot.slane %v48_v54, %v56_v55  ;;  %v718_v5 = vld [vmem:[%s893_s5 + $0x8] sm:$0xff]   ;;  %v719_v6 = vld [vmem:[%s893_s5 + $0x40] sm:$0xff]  }
  0x21   :  { %627 = vmatpush3.bf16.msra.mxu0 %v708_v42  ;;  %v720_v7 = vld [vmem:[%s893_s5] sm:$0xff]  }
  0x22   :  { %342 = vmatpush1.bf16.msra.mxu1 %v671_v16  ;;  %628 = vmatprep.subr.bf16.mxu0 %v709_v43  ;;  %v161_v8 = vld [vmem:[%s892_s4] sm:$0x3]  ;;  %s769_s4 = smov [#allocation5]  }
  0x23   :  { %343 = vmatprep.subr.bf16.mxu1 %v672_v17  ;;  %v166_v9 = vrot.slane %v161_v8, %v52_v53  ;;  %v170_v10 = vrot.slane %v161_v8, %v56_v55  ;;  %s561_s25 = sshll.u32 %s769_s4, 4  ;;  %s562_s25 = int_to_ptr.vmem [resolvable:$true] %s561_s25 }
  0x24   :  { %s741_s26 = scalar_lea.vmem %s562_s25, 128  ;;  %p746_p6 = scmp.lt.s32.totalorder %s562_s25, %s562_s25 }
  0x25   :  { %629 = vmatpush3.bf16.msra.mxu0 %v710_v44  ;;  %p742_p5 = scmp.ne.s32.totalorder %s562_s25, %s741_s26  ;;  %p747_p7 = scmp.lt.s32.totalorder %s741_s26, %s741_s26 }
  0x26   :  { %344 = vmatpush1.bf16.msra.mxu1 %v674_v18  ;;  %630 = vmatprep.subr.bf16.mxu0 %v711_v45 }
  0x27   :  { %345 = vmatprep.subr.bf16.mxu1 %v675_v19  ;;  %p748_p8 = por %p747_p7, %p746_p6 }
  0x29   :  { %631 = vmatpush3.bf16.msra.mxu0 %v712_v46  ;;  %p749_p9 = pnand %p748_p8, %p742_p5 }
  0x2a   :  { %346 = vmatpush1.bf16.msra.mxu1 %v677_v20  ;;  %632 = vmatprep.subr.bf16.mxu0 %v713_v47 }
  0x2b   :  { %347 = vmatprep.subr.bf16.mxu1 %v678_v21 }
  0x2d   :  { %633 = vmatpush3.bf16.msra.mxu0 %v714_v48 }
  0x2e   :  { %348 = vmatpush1.bf16.msra.mxu1 %v680_v22  ;;  %634 = vmatprep.subr.bf16.mxu0 %v715_v49  ;;  %v607_v22 = vld [vmem:[%s894_s6] ss:$0 sm:$0xff] }
  0x2f   :  { %349 = vmatprep.subr.bf16.mxu1 %v681_v23 }
  0x31   :  { %635 = vmatpush3.bf16.msra.mxu0 %v716_v50 }
  0x32   :  { %350 = vmatpush2.bf16.msra.mxu1 %v683_v24  ;;  %636 = vmatprep.subr.bf16.mxu0 %v717_v4 }
  0x33   :  { %351 = vmatprep.subr.bf16.mxu1 %v684_v25 }
  0x35   :  { %637 = vmatpush3.bf16.msra.mxu0 %v718_v5 }
  0x36   :  { %352 = vmatpush2.bf16.msra.mxu1 %v686_v26  ;;  %638 = vmatprep.subr.bf16.mxu0 %v719_v6 }
  0x37   :  { %353 = vmatprep.subr.bf16.mxu1 %v687_v27 }
  0x39   :  { %639 = vmatpush3.bf16.msra.mxu0 %v720_v7 }
  0x3a   :  { %354 = vmatpush2.bf16.msra.mxu1 %v689_v28 }
  0x3b   :  { %355 = vmatprep.subr.bf16.mxu1 %v690_v29 }
  0x3e   :  { %356 = vmatpush2.bf16.msra.mxu1 %v692_v30 }
  0x3f   :  { %357 = vmatprep.subr.bf16.mxu1 %v693_v31 }
  0x42   :  { %358 = vmatpush2.bf16.msra.mxu1 %v695_v32 }
  0x43   :  { %359 = vmatprep.subr.bf16.mxu1 %v696_v33 }
  0x46   :  { %360 = vmatpush2.bf16.msra.mxu1 %v698_v34 }
  0x47   :  { %361 = vmatprep.subr.bf16.mxu1 %v699_v35 }
  0x4a   :  { %362 = vmatpush2.bf16.msra.mxu1 %v701_v36 }
  0x4b   :  { %363 = vmatprep.subr.bf16.mxu1 %v702_v37 }
  0x4e   :  { %364 = vmatpush2.bf16.msra.mxu1 %v704_v38 }
  0xd7   :  { %v118_v58 = vpop.f32.mrf.mxu0 }
  0xd8   :  { %v119_v59 = vadd.f32 %v118_v58, %v53_v56 }
  0xd9   :  { %v120_v60 = vpop.f32.mrf.mxu0 }
  0xda   :  { %v121_v61 = vadd.f32 %v120_v60, %v57_v57  ;;  %v125_v62 = vmax.f32 %v119_v59, 0.0 }
  0xdb   :  { %v122_v63 = vpop.f32.mrf.mxu0 }
  0xdc   :  { %v126_v0 = vmax.f32 %v121_v61, 0.0  ;;  %v127_v3 = vpack.c.bf16 %v125_v62, %v125_v62 }
  0xdd   :  { %v123_v1 = vpop.f32.mrf.mxu0 }
  0xde   :  { %v128_v2 = vpack.c.bf16 %v126_v0, %v126_v0 }
  0xe0   :  { %365 = vmatprep.mubr.bf16.mxu1 %v128_v2 }
  0xe1   :  { %366 = vmatmul.mubr.bf16.vlgmr.msra.gmra.mxu1 %v127_v3 }
 0x1a1   :  { %v367_v11 = vpop.f32.mrf.mxu1 }
 0x1a2   :  { %v368_v12 = vadd.f32 %v367_v11, %v166_v9 }
 0x1a3   :  { %v369_v13 = vpop.f32.mrf.mxu1 }
 0x1a4   :  { %v370_v14 = vadd.f32 %v369_v13, %v170_v10  ;;  %v374_v15 = vmax.f32 %v368_v12, 0.0 }
 0x1a5   :  { %v371_v16 = vpop.f32.mrf.mxu1 }
 0x1a6   :  { %v375_v17 = vmax.f32 %v370_v14, 0.0  ;;  %v376_v20 = vpack.c.bf16 %v374_v15, %v374_v15 }
 0x1a7   :  { %v372_v18 = vpop.f32.mrf.mxu1 }
 0x1a8   :  { %v377_v19 = vpack.c.bf16 %v375_v17, %v375_v17 }
 0x1aa   :  { %545 = vmatprep.mubr.bf16.mxu0 %v377_v19 }
 0x1ab   :  { %546 = vmatmul.mubr.bf16.vlgmr.msra.gmra.mxu0 %v376_v20 }
 0x26b   :  { %v640_v21 = vpop.f32.mrf.mxu0 }
 0x26d   :  { %v641_v23 = vpop.f32.mrf.mxu0 }
 0x26e   :  { %v642_v24 = vadd.f32 %v641_v23, %v640_v21 }
 0x26f   :  { %v643_v25 = vpop.f32.mrf.mxu0 }
 0x270   :  { %v548_v26 = vadd.f32 %v642_v24, %v607_v22 }
 0x271   :  { %v644_v27 = vpop.f32.mrf.mxu0 }
 0x272   :  { %554 = vst.msk [vmem:[#allocation5] sm:$0xff] %vm553_vm1, %v548_v26 }
 0x273   :  { %752 = shalt.err (!%p749_p9)
}
 0x274   :  { %564 = dma.vmem_to_hbm [thread:$0]  %s562_s25, 128, %s895_s7, [#allocation4]  }
 0x275   :  { %763 = dma.done.wait [#allocation4], 128  }
 0x276   :  { %764 = vsyncadd [#allocation4], 4294967168 }
 0x277   :  { %568 = vsyncpa [#allocation3], 1 }
 0x278   :  { %569 = vsyncpa [#allocation4], 1 }

</bundles_post_ra>
